<compile_context>
chip_gen: v7x
topology: tpu7x:2x2x1
jax: 0.10.0
libtpu: 0.0.40
codegen_flags: <defaults>
</compile_context>

<pallas_src>
import functools

import jax
import jax.numpy as jnp
from jax import lax
from jax.experimental import pallas as pl
from jax.experimental.pallas import tpu as pltpu


def _residual_block_kernel(x_ref, w1_ref, b1_ref, w2_ref, b2_ref, *rest,
                           L: int, project_shortcut: bool):
    """One batch element per grid step.

    x_ref   : (1, C_in,  L)      raw (un-padded) input block
    w1_ref  : (3, C_out, C_in)   conv1 weight, tap-major
    b1_ref  : (C_out, 1)
    w2_ref  : (3, C_out, C_out)  conv2 weight, tap-major
    b2_ref  : (C_out, 1)
    [ws_ref : (C_out, C_in), bs_ref: (C_out, 1)]   only if project_shortcut
    out_ref : (1, C_out, L)
    xpad_ref: (C_in,  L+2)       VMEM scratch: zero-padded input slab
    hpad_ref: (C_out, L+2)       VMEM scratch: zero-padded hidden slab
    """
    if project_shortcut:
        ws_ref, bs_ref, out_ref, xpad_ref, hpad_ref = rest
    else:
        out_ref, xpad_ref, hpad_ref = rest

    f32 = jnp.float32
    x = x_ref[0]                                        # (C_in, L)

    # ---- zero-pad the input inside VMEM (halo columns only; interior overwritten) ----
    c_in = xpad_ref.shape[0]
    xpad_ref[:, 0:1] = jnp.zeros((c_in, 1), f32)
    xpad_ref[:, L + 1:L + 2] = jnp.zeros((c_in, 1), f32)
    xpad_ref[:, 1:L + 1] = x

    # ---- conv1 (k=3, pad=1): three length-shifted MXU matmuls ----
    acc = jnp.dot(w1_ref[0], xpad_ref[:, 0:L], preferred_element_type=f32)
    acc += jnp.dot(w1_ref[1], xpad_ref[:, 1:L + 1], preferred_element_type=f32)
    acc += jnp.dot(w1_ref[2], xpad_ref[:, 2:L + 2], preferred_element_type=f32)
    h = jnp.maximum(acc + b1_ref[...], 0.0)             # (C_out, L)  ReLU

    # ---- zero-pad the hidden activation (halo columns only) ----
    c_out = hpad_ref.shape[0]
    hpad_ref[:, 0:1] = jnp.zeros((c_out, 1), f32)
    hpad_ref[:, L + 1:L + 2] = jnp.zeros((c_out, 1), f32)
    hpad_ref[:, 1:L + 1] = h

    # ---- conv2 (k=3, pad=1) ----
    acc2 = jnp.dot(w2_ref[0], hpad_ref[:, 0:L], preferred_element_type=f32)
    acc2 += jnp.dot(w2_ref[1], hpad_ref[:, 1:L + 1], preferred_element_type=f32)
    acc2 += jnp.dot(w2_ref[2], hpad_ref[:, 2:L + 2], preferred_element_type=f32)
    out = acc2 + b2_ref[...]

    # ---- shortcut (1x1 conv projection or identity), residual add, final ReLU ----
    if project_shortcut:
        identity = jnp.dot(ws_ref[...], x,
                           preferred_element_type=f32) + bs_ref[...]
    else:
        identity = x

    out_ref[0] = jnp.maximum(out + identity, 0.0)


def residual_block(x, w1, b1, w2, b2, ws=None, bs=None):
    """Pallas TPU forward pass of the PyTorch ResidualBlock.

    x : (B, C_in, L) float32
    w1: (C_out, C_in, 3),  b1: (C_out,)
    w2: (C_out, C_out, 3), b2: (C_out,)
    ws: (C_out, C_in, 1) + bs: (C_out,)   (None, None) -> identity shortcut
    """
    B, C_in, L = x.shape
    C_out = w1.shape[0]
    project_shortcut = ws is not None
    if not project_shortcut:
        assert C_in == C_out, "identity shortcut requires in_channels == out_channels"

    f32 = jnp.float32
    # Glue done once outside the kernel: tap-major weights + column biases.
    # (No padded copy of x is created in HBM any more — padding happens in-kernel.)
    x = x.astype(f32)
    w1t = jnp.transpose(w1.astype(f32), (2, 0, 1))                 # (3, C_out, C_in)
    w2t = jnp.transpose(w2.astype(f32), (2, 0, 1))                 # (3, C_out, C_out)
    b1c = b1.astype(f32).reshape(C_out, 1)
    b2c = b2.astype(f32).reshape(C_out, 1)

    Lp = L + 2
    in_specs = [
        pl.BlockSpec((1, C_in, L), lambda b: (b, 0, 0)),
        pl.BlockSpec((3, C_out, C_in), lambda b: (0, 0, 0)),
        pl.BlockSpec((C_out, 1), lambda b: (0, 0)),
        pl.BlockSpec((3, C_out, C_out), lambda b: (0, 0, 0)),
        pl.BlockSpec((C_out, 1), lambda b: (0, 0)),
    ]
    args = [x, w1t, b1c, w2t, b2c]
    if project_shortcut:
        wst = ws.astype(f32)[:, :, 0]                              # (C_out, C_in)
        bsc = bs.astype(f32).reshape(C_out, 1)
        in_specs += [pl.BlockSpec((C_out, C_in), lambda b: (0, 0)),
                     pl.BlockSpec((C_out, 1), lambda b: (0, 0))]
        args += [wst, bsc]

    kernel = functools.partial(_residual_block_kernel, L=L,
                               project_shortcut=project_shortcut)

    return pl.pallas_call(
        kernel,
        out_shape=jax.ShapeDtypeStruct((B, C_out, L), f32),
        grid=(B,),
        in_specs=in_specs,
        out_specs=pl.BlockSpec((1, C_out, L), lambda b: (b, 0, 0)),
        scratch_shapes=[pltpu.VMEM((C_in, Lp), f32),
                        pltpu.VMEM((C_out, Lp), f32)],
        compiler_params=pltpu.CompilerParams(
            dimension_semantics=("parallel",)),
    )(*args)


# ---------------------- pure-JAX reference ----------------------
def _conv1d_ref(x, w, b, padding):
    out = lax.conv_general_dilated(
        x, w, window_strides=(1,), padding=[(padding, padding)],
        dimension_numbers=("NCH", "OIH", "NCH"))
    return out + b[None, :, None]


def _reference(x, w1, b1, w2, b2, ws=None, bs=None):
    identity = x if ws is None else _conv1d_ref(x, ws, bs, 0)
    out = jax.nn.relu(_conv1d_ref(x, w1, b1, 1))
    out = _conv1d_ref(out, w2, b2, 1)
    return jax.nn.relu(out + identity)


if __name__ == "__main__":
    key = jax.random.PRNGKey(0)
    B, C_in, C_out, L = 2, 4, 8, 16
    ks = jax.random.split(key, 8)

    x = jax.random.normal(ks[0], (B, C_in, L), dtype=jnp.float32)
    w1 = jax.random.normal(ks[1], (C_out, C_in, 3), dtype=jnp.float32) * 0.3
    b1 = jax.random.normal(ks[2], (C_out,), dtype=jnp.float32) * 0.1
    w2 = jax.random.normal(ks[3], (C_out, C_out, 3), dtype=jnp.float32) * 0.3
    b2 = jax.random.normal(ks[4], (C_out,), dtype=jnp.float32) * 0.1
    ws = jax.random.normal(ks[5], (C_out, C_in, 1), dtype=jnp.float32) * 0.3
    bs = jax.random.normal(ks[6], (C_out,), dtype=jnp.float32) * 0.1

    # in_channels != out_channels -> projected (1x1 conv) shortcut
    out = jax.block_until_ready(residual_block(x, w1, b1, w2, b2, ws, bs))
    ref = _reference(x, w1, b1, w2, b2, ws, bs)
    assert out.shape == (B, C_out, L)
    assert jnp.allclose(out, ref, atol=1e-4, rtol=1e-4), float(jnp.max(jnp.abs(out - ref)))

    # in_channels == out_channels -> identity shortcut
    x2 = jax.random.normal(ks[7], (B, C_out, L), dtype=jnp.float32)
    w1b = jax.random.normal(ks[1], (C_out, C_out, 3), dtype=jnp.float32) * 0.3
    out2 = jax.block_until_ready(residual_block(x2, w1b, b1, w2, b2))
    ref2 = _reference(x2, w1b, b1, w2, b2)
    assert jnp.allclose(out2, ref2, atol=1e-4, rtol=1e-4), float(jnp.max(jnp.abs(out2 - ref2)))

    print("KERNEL_OK")
</pallas_src>

<mosaic_0001>
module attributes {stable_mosaic.version = 11 : i64} {
  func.func @_residual_block_kernel(%arg0: i32, %arg1: memref<1x4x16xf32, #tpu.memory_space<vmem>>, %arg2: memref<3x8x4xf32, #tpu.memory_space<vmem>>, %arg3: memref<8x1xf32, #tpu.memory_space<vmem>>, %arg4: memref<3x8x8xf32, #tpu.memory_space<vmem>>, %arg5: memref<8x1xf32, #tpu.memory_space<vmem>>, %arg6: memref<8x4xf32, #tpu.memory_space<vmem>>, %arg7: memref<8x1xf32, #tpu.memory_space<vmem>>, %arg8: memref<1x8x16xf32, #tpu.memory_space<vmem>>, %arg9: memref<4x18xf32, #tpu.memory_space<vmem>>, %arg10: memref<8x18xf32, #tpu.memory_space<vmem>>) attributes {dimension_semantics = [#tpu.dimension_semantics<parallel>], iteration_bounds = array<i64: 2>, scalar_prefetch = 0 : i64, scratch_operands = 2 : i64, tpu.core_type = #tpu.core_type<tc>, window_params = [{transform_indices = @transform_0, window_bounds = array<i64: 1, 4, 16>}, {pipeline_mode = #tpu.pipeline_mode<synchronous>, transform_indices = @transform_1, window_bounds = array<i64: 3, 8, 4>}, {pipeline_mode = #tpu.pipeline_mode<synchronous>, transform_indices = @transform_2, window_bounds = array<i64: 8, 1>}, {pipeline_mode = #tpu.pipeline_mode<synchronous>, transform_indices = @transform_3, window_bounds = array<i64: 3, 8, 8>}, {pipeline_mode = #tpu.pipeline_mode<synchronous>, transform_indices = @transform_4, window_bounds = array<i64: 8, 1>}, {pipeline_mode = #tpu.pipeline_mode<synchronous>, transform_indices = @transform_5, window_bounds = array<i64: 8, 4>}, {pipeline_mode = #tpu.pipeline_mode<synchronous>, transform_indices = @transform_6, window_bounds = array<i64: 8, 1>}, {transform_indices = @transform_7, window_bounds = array<i64: 1, 8, 16>}]} {
    %c0 = arith.constant 0 : index
    %c0_0 = arith.constant 0 : index
    %c0_1 = arith.constant 0 : index
    %0 = vector.load %arg1[%c0, %c0_0, %c0_1] : memref<1x4x16xf32, #tpu.memory_space<vmem>>, vector<1x4x16xf32>
    %1 = vector.shape_cast %0 : vector<1x4x16xf32> to vector<4x16xf32>
    %cst = arith.constant 0.000000e+00 : f32
    %2 = vector.broadcast %cst : f32 to vector<4x1xf32>
    %c0_2 = arith.constant 0 : index
    %c0_3 = arith.constant 0 : index
    %3 = vector.load %arg9[%c0_2, %c0_3] : memref<4x18xf32, #tpu.memory_space<vmem>>, vector<4x1xf32>
    tpu.vector_store %arg9[%c0_2, %c0_3], %2 {strides = array<i32>} : memref<4x18xf32, #tpu.memory_space<vmem>>, vector<4x1xf32>,
    %cst_4 = arith.constant 0.000000e+00 : f32
    %4 = vector.broadcast %cst_4 : f32 to vector<4x1xf32>
    %c0_5 = arith.constant 0 : index
    %c17 = arith.constant 17 : index
    %5 = vector.load %arg9[%c0_5, %c17] : memref<4x18xf32, #tpu.memory_space<vmem>>, vector<4x1xf32>
    tpu.vector_store %arg9[%c0_5, %c17], %4 {strides = array<i32>} : memref<4x18xf32, #tpu.memory_space<vmem>>, vector<4x1xf32>,
    %c0_6 = arith.constant 0 : index
    %c1 = arith.constant 1 : index
    %6 = vector.load %arg9[%c0_6, %c1] : memref<4x18xf32, #tpu.memory_space<vmem>>, vector<4x16xf32>
    tpu.vector_store %arg9[%c0_6, %c1], %1 {strides = array<i32>} : memref<4x18xf32, #tpu.memory_space<vmem>>, vector<4x16xf32>,
    %c0_7 = arith.constant 0 : index
    %c0_8 = arith.constant 0 : index
    %c0_9 = arith.constant 0 : index
    %7 = vector.load %arg2[%c0_7, %c0_8, %c0_9] : memref<3x8x4xf32, #tpu.memory_space<vmem>>, vector<1x8x4xf32>
    %8 = vector.shape_cast %7 : vector<1x8x4xf32> to vector<8x4xf32>
    %c0_10 = arith.constant 0 : index
    %c0_11 = arith.constant 0 : index
    %9 = vector.load %arg9[%c0_10, %c0_11] : memref<4x18xf32, #tpu.memory_space<vmem>>, vector<4x16xf32>
    %cst_12 = arith.constant dense<0.000000e+00> : vector<8x16xf32>
    %10 = tpu.matmul %8, %9, %cst_12 {dimension_numbers = #tpu.dot_dimension_numbers<[1], [0], [0], [1], [0, 0, 1, 1], [], []>} : vector<8x4xf32>, vector<4x16xf32>, vector<8x16xf32> -> vector<8x16xf32>
    %c1_13 = arith.constant 1 : index
    %c0_14 = arith.constant 0 : index
    %c0_15 = arith.constant 0 : index
    %11 = vector.load %arg2[%c1_13, %c0_14, %c0_15] : memref<3x8x4xf32, #tpu.memory_space<vmem>>, vector<1x8x4xf32>
    %12 = vector.shape_cast %11 : vector<1x8x4xf32> to vector<8x4xf32>
    %c0_16 = arith.constant 0 : index
    %c1_17 = arith.constant 1 : index
    %13 = vector.load %arg9[%c0_16, %c1_17] : memref<4x18xf32, #tpu.memory_space<vmem>>, vector<4x16xf32>
    %cst_18 = arith.constant dense<0.000000e+00> : vector<8x16xf32>
    %14 = tpu.matmul %12, %13, %cst_18 {dimension_numbers = #tpu.dot_dimension_numbers<[1], [0], [0], [1], [0, 0, 1, 1], [], []>} : vector<8x4xf32>, vector<4x16xf32>, vector<8x16xf32> -> vector<8x16xf32>
    %15 = arith.addf %10, %14 : vector<8x16xf32>
    %c2 = arith.constant 2 : index
    %c0_19 = arith.constant 0 : index
    %c0_20 = arith.constant 0 : index
    %16 = vector.load %arg2[%c2, %c0_19, %c0_20] : memref<3x8x4xf32, #tpu.memory_space<vmem>>, vector<1x8x4xf32>
    %17 = vector.shape_cast %16 : vector<1x8x4xf32> to vector<8x4xf32>
    %c0_21 = arith.constant 0 : index
    %c2_22 = arith.constant 2 : index
    %18 = vector.load %arg9[%c0_21, %c2_22] : memref<4x18xf32, #tpu.memory_space<vmem>>, vector<4x16xf32>
    %cst_23 = arith.constant dense<0.000000e+00> : vector<8x16xf32>
    %19 = tpu.matmul %17, %18, %cst_23 {dimension_numbers = #tpu.dot_dimension_numbers<[1], [0], [0], [1], [0, 0, 1, 1], [], []>} : vector<8x4xf32>, vector<4x16xf32>, vector<8x16xf32> -> vector<8x16xf32>
    %20 = arith.addf %15, %19 : vector<8x16xf32>
    %c0_24 = arith.constant 0 : index
    %c0_25 = arith.constant 0 : index
    %21 = vector.load %arg3[%c0_24, %c0_25] : memref<8x1xf32, #tpu.memory_space<vmem>>, vector<8x1xf32>
    %22 = vector.broadcast %21 : vector<8x1xf32> to vector<8x16xf32>
    %23 = arith.addf %20, %22 : vector<8x16xf32>
    %cst_26 = arith.constant 0.000000e+00 : f32
    %24 = vector.broadcast %cst_26 : f32 to vector<8x16xf32>
    %25 = arith.maximumf %23, %24 : vector<8x16xf32>
    %cst_27 = arith.constant 0.000000e+00 : f32
    %26 = vector.broadcast %cst_27 : f32 to vector<8x1xf32>
    %c0_28 = arith.constant 0 : index
    %c0_29 = arith.constant 0 : index
    %27 = vector.load %arg10[%c0_28, %c0_29] : memref<8x18xf32, #tpu.memory_space<vmem>>, vector<8x1xf32>
    tpu.vector_store %arg10[%c0_28, %c0_29], %26 {strides = array<i32>} : memref<8x18xf32, #tpu.memory_space<vmem>>, vector<8x1xf32>,
    %cst_30 = arith.constant 0.000000e+00 : f32
    %28 = vector.broadcast %cst_30 : f32 to vector<8x1xf32>
    %c0_31 = arith.constant 0 : index
    %c17_32 = arith.constant 17 : index
    %29 = vector.load %arg10[%c0_31, %c17_32] : memref<8x18xf32, #tpu.memory_space<vmem>>, vector<8x1xf32>
    tpu.vector_store %arg10[%c0_31, %c17_32], %28 {strides = array<i32>} : memref<8x18xf32, #tpu.memory_space<vmem>>, vector<8x1xf32>,
    %c0_33 = arith.constant 0 : index
    %c1_34 = arith.constant 1 : index
    %30 = vector.load %arg10[%c0_33, %c1_34] : memref<8x18xf32, #tpu.memory_space<vmem>>, vector<8x16xf32>
    tpu.vector_store %arg10[%c0_33, %c1_34], %25 {strides = array<i32>} : memref<8x18xf32, #tpu.memory_space<vmem>>, vector<8x16xf32>,
    %c0_35 = arith.constant 0 : index
    %c0_36 = arith.constant 0 : index
    %c0_37 = arith.constant 0 : index
    %31 = vector.load %arg4[%c0_35, %c0_36, %c0_37] : memref<3x8x8xf32, #tpu.memory_space<vmem>>, vector<1x8x8xf32>
    %32 = vector.shape_cast %31 : vector<1x8x8xf32> to vector<8x8xf32>
    %c0_38 = arith.constant 0 : index
    %c0_39 = arith.constant 0 : index
    %33 = vector.load %arg10[%c0_38, %c0_39] : memref<8x18xf32, #tpu.memory_space<vmem>>, vector<8x16xf32>
    %cst_40 = arith.constant dense<0.000000e+00> : vector<8x16xf32>
    %34 = tpu.matmul %32, %33, %cst_40 {dimension_numbers = #tpu.dot_dimension_numbers<[1], [0], [0], [1], [0, 0, 1, 1], [], []>} : vector<8x8xf32>, vector<8x16xf32>, vector<8x16xf32> -> vector<8x16xf32>
    %c1_41 = arith.constant 1 : index
    %c0_42 = arith.constant 0 : index
    %c0_43 = arith.constant 0 : index
    %35 = vector.load %arg4[%c1_41, %c0_42, %c0_43] : memref<3x8x8xf32, #tpu.memory_space<vmem>>, vector<1x8x8xf32>
    %36 = vector.shape_cast %35 : vector<1x8x8xf32> to vector<8x8xf32>
    %c0_44 = arith.constant 0 : index
    %c1_45 = arith.constant 1 : index
    %37 = vector.load %arg10[%c0_44, %c1_45] : memref<8x18xf32, #tpu.memory_space<vmem>>, vector<8x16xf32>
    %cst_46 = arith.constant dense<0.000000e+00> : vector<8x16xf32>
    %38 = tpu.matmul %36, %37, %cst_46 {dimension_numbers = #tpu.dot_dimension_numbers<[1], [0], [0], [1], [0, 0, 1, 1], [], []>} : vector<8x8xf32>, vector<8x16xf32>, vector<8x16xf32> -> vector<8x16xf32>
    %39 = arith.addf %34, %38 : vector<8x16xf32>
    %c2_47 = arith.constant 2 : index
    %c0_48 = arith.constant 0 : index
    %c0_49 = arith.constant 0 : index
    %40 = vector.load %arg4[%c2_47, %c0_48, %c0_49] : memref<3x8x8xf32, #tpu.memory_space<vmem>>, vector<1x8x8xf32>
    %41 = vector.shape_cast %40 : vector<1x8x8xf32> to vector<8x8xf32>
    %c0_50 = arith.constant 0 : index
    %c2_51 = arith.constant 2 : index
    %42 = vector.load %arg10[%c0_50, %c2_51] : memref<8x18xf32, #tpu.memory_space<vmem>>, vector<8x16xf32>
    %cst_52 = arith.constant dense<0.000000e+00> : vector<8x16xf32>
    %43 = tpu.matmul %41, %42, %cst_52 {dimension_numbers = #tpu.dot_dimension_numbers<[1], [0], [0], [1], [0, 0, 1, 1], [], []>} : vector<8x8xf32>, vector<8x16xf32>, vector<8x16xf32> -> vector<8x16xf32>
    %44 = arith.addf %39, %43 : vector<8x16xf32>
    %c0_53 = arith.constant 0 : index
    %c0_54 = arith.constant 0 : index
    %45 = vector.load %arg5[%c0_53, %c0_54] : memref<8x1xf32, #tpu.memory_space<vmem>>, vector<8x1xf32>
    %46 = vector.broadcast %45 : vector<8x1xf32> to vector<8x16xf32>
    %47 = arith.addf %44, %46 : vector<8x16xf32>
    %c0_55 = arith.constant 0 : index
    %c0_56 = arith.constant 0 : index
    %48 = vector.load %arg6[%c0_55, %c0_56] : memref<8x4xf32, #tpu.memory_space<vmem>>, vector<8x4xf32>
    %cst_57 = arith.constant dense<0.000000e+00> : vector<8x16xf32>
    %49 = tpu.matmul %48, %1, %cst_57 {dimension_numbers = #tpu.dot_dimension_numbers<[1], [0], [0], [1], [0, 0, 1, 1], [], []>} : vector<8x4xf32>, vector<4x16xf32>, vector<8x16xf32> -> vector<8x16xf32>
    %c0_58 = arith.constant 0 : index
    %c0_59 = arith.constant 0 : index
    %50 = vector.load %arg7[%c0_58, %c0_59] : memref<8x1xf32, #tpu.memory_space<vmem>>, vector<8x1xf32>
    %51 = vector.broadcast %50 : vector<8x1xf32> to vector<8x16xf32>
    %52 = arith.addf %49, %51 : vector<8x16xf32>
    %53 = arith.addf %47, %52 : vector<8x16xf32>
    %cst_60 = arith.constant 0.000000e+00 : f32
    %54 = vector.broadcast %cst_60 : f32 to vector<8x16xf32>
    %55 = arith.maximumf %53, %54 : vector<8x16xf32>
    %c0_61 = arith.constant 0 : index
    %c0_62 = arith.constant 0 : index
    %c0_63 = arith.constant 0 : index
    %56 = vector.load %arg8[%c0_61, %c0_62, %c0_63] : memref<1x8x16xf32, #tpu.memory_space<vmem>>, vector<1x8x16xf32>
    %57 = vector.shape_cast %56 : vector<1x8x16xf32> to vector<8x16xf32>
    %58 = vector.shape_cast %55 : vector<8x16xf32> to vector<1x8x16xf32>
    tpu.vector_store %arg8[%c0_61, %c0_62, %c0_63], %58 {strides = array<i32>} : memref<1x8x16xf32, #tpu.memory_space<vmem>>, vector<1x8x16xf32>,
    return
  }
  func.func @transform_0(%arg0: i32) -> (i32, i32, i32) {
    %c0_i32 = arith.constant 0 : i32
    %c0_i32_0 = arith.constant 0 : i32
    %c0_i32_1 = arith.constant 0 : i32
    return %arg0, %c0_i32, %c0_i32_0 : i32, i32, i32
  }
  func.func @transform_1(%arg0: i32) -> (i32, i32, i32) {
    %c0_i32 = arith.constant 0 : i32
    %c0_i32_0 = arith.constant 0 : i32
    %c0_i32_1 = arith.constant 0 : i32
    %c0_i32_2 = arith.constant 0 : i32
    return %c0_i32, %c0_i32_0, %c0_i32_1 : i32, i32, i32
  }
  func.func @transform_2(%arg0: i32) -> (i32, i32) {
    %c0_i32 = arith.constant 0 : i32
    %c0_i32_0 = arith.constant 0 : i32
    %c0_i32_1 = arith.constant 0 : i32
    return %c0_i32, %c0_i32_0 : i32, i32
  }
  func.func @transform_3(%arg0: i32) -> (i32, i32, i32) {
    %c0_i32 = arith.constant 0 : i32
    %c0_i32_0 = arith.constant 0 : i32
    %c0_i32_1 = arith.constant 0 : i32
    %c0_i32_2 = arith.constant 0 : i32
    return %c0_i32, %c0_i32_0, %c0_i32_1 : i32, i32, i32
  }
  func.func @transform_4(%arg0: i32) -> (i32, i32) {
    %c0_i32 = arith.constant 0 : i32
    %c0_i32_0 = arith.constant 0 : i32
    %c0_i32_1 = arith.constant 0 : i32
    return %c0_i32, %c0_i32_0 : i32, i32
  }
  func.func @transform_5(%arg0: i32) -> (i32, i32) {
    %c0_i32 = arith.constant 0 : i32
    %c0_i32_0 = arith.constant 0 : i32
    %c0_i32_1 = arith.constant 0 : i32
    return %c0_i32, %c0_i32_0 : i32, i32
  }
  func.func @transform_6(%arg0: i32) -> (i32, i32) {
    %c0_i32 = arith.constant 0 : i32
    %c0_i32_0 = arith.constant 0 : i32
    %c0_i32_1 = arith.constant 0 : i32
    return %c0_i32, %c0_i32_0 : i32, i32
  }
  func.func @transform_7(%arg0: i32) -> (i32, i32, i32) {
    %c0_i32 = arith.constant 0 : i32
    %c0_i32_0 = arith.constant 0 : i32
    %c0_i32_1 = arith.constant 0 : i32
    return %arg0, %c0_i32, %c0_i32_0 : i32, i32, i32
  }
}

</mosaic_0001>

<bundles_post_ra>
// kernel: tpu_custom_call.1
= control target key start
LH: loop header
LB: loop body
LE: loop exit
PB: predicated region body
PF: predicated region fallthrough
CT: control target
= control target key end

     0   :  { %12 = vsyncpa [#allocation5], 0  ;;  %s1355_s0 = inlined_call_operand.vmem [shape: f32[2,4,16], index: 0, kind: input, shape index: {}]   ;;  %s1356_s1 = inlined_call_operand.vmem [shape: f32[3,8,4], index: 1, kind: input, shape index: {}]   ;;  %s1357_s2 = inlined_call_operand.vmem [shape: f32[8,1], index: 2, kind: input, shape index: {}]   ;;  %s1358_s3 = inlined_call_operand.vmem [shape: f32[3,8,8], index: 3, kind: input, shape index: {}]   ;;  %s1359_s4 = inlined_call_operand.vmem [shape: f32[8,1], index: 4, kind: input, shape index: {}]   ;;  %s1360_s5 = inlined_call_operand.vmem [shape: f32[8,4], index: 5, kind: input, shape index: {}]   ;;  %s1361_s6 = inlined_call_operand.vmem [shape: f32[8,1], index: 6, kind: input, shape index: {}]   ;;  %s1362_s7 = inlined_call_operand.hbm [shape: f32[2,8,16], index: 7, kind: output, shape index: {}]  }
   0x1   :  { %14 = vsyncpa [#allocation5 + $0x1], 0  ;;  %s1182_s24 = smov 0   ;;  %s1184_s25 = smov 0  }
   0x2   :  { %s1186_s26 = smov 0   ;;  %s1188_s27 = smov 0  }
   0x3 LB: > { %s1203_s28 = sadd.s32 4294967295, %s1133_s27   ;;  %s942_s29 = sadd.s32 4294967294, %s1133_s27   ;;  %s1133_s27 = sphi %s1188_s27, %s1368_s27   ;;  %s1129_s26 = sphi %s1186_s26, %s1367_s26   ;;  %s1125_s25 = sphi %s1184_s25, %s1366_s25   ;;  %s1121_s24 = sphi %s1182_s24, %s1365_s24  }
   0x4   : > { %s1207_s30 = sadd.s32 1, %s1133_s27   ;;  %s179_s8 = sadd.s32 1, %s1129_s26 }
   0x5   : > { %s176_s9 = ssub.s32 %s1133_s27, %s1207_s30  ;;  %p189_p0 = scmp.ne.s32.totalorder %s1129_s26, %s1125_s25 }
   0x6   : > { %p177_p1 = scmp.eq.s32.totalorder %s176_s9, 0  ;;  %p190_p2 = scmp.eq.s32.totalorder %s1203_s28, 1 }
   0x7   : > { %p195_p3 = scmp.ne.s32.totalorder %s1125_s25, %s1121_s24  ;;  %p196_p4 = scmp.eq.s32.totalorder %s942_s29, 1 }
   0x8   : > { %s1218_s10 = scalar_select %p177_p1, %s1129_s26, %s179_s8  }
   0x9   : > { %p1220_p5 = por %p190_p2, %p189_p0  ;;  %p1224_p6 = por %p196_p4, %p195_p3 }
   0xa   : > { %p945_p7 = scmp.ge.s32.totalorder %s1133_s27, 1  ;;  %p239_p8 = scmp.lt.s32.totalorder %s1133_s27, 3 }
   0xc   : > { %p240_p9 = pnand %p945_p7, %p239_p8 }
   0xd   : > { %p270_p10 = scmp.lt.s32.totalorder (!%p240_p9), %s1203_s28, 1  ;;  %vm275_vm0 = vcmask (!%p240_p9), 3072   ;;  %vm277_vm1 = vcmask (!%p240_p9), 142472   ;;  %v1135_v0 = vmov (!%p240_p9), 0.0   ;;  %s1136_s18 = smov (!%p240_p9), 1   ;;  %vm1137_vm2 = vmmov (!%p240_p9), 0  }
   0xe   : > { %243 = sbr.rel (%p240_p9) target bundleno = 984 (0x3d8), region = 48  ;;  %276 = vst.msk [vmem:[#allocation2] sm:$0xf] (!%p240_p9), %vm275_vm0, %v1135_v0  ;;  %981 = vmatprep.subr.mxu0 (!%p240_p9), %v1135_v0  ;;  %996 = vmatprep.subr.mxu1 (!%p240_p9), %v1135_v0  ;;  %vm283_vm3 = vcmask (!%p240_p9), 134152   ;;  %v1138_v3 = vmov (!%p240_p9), 0   ;;  %s1139_s19 = smov (!%p240_p9), 126  }
   0xf   : > { %278 = vst.msk [vmem:[#allocation2] sm:$0xf] (!%p240_p9), %vm277_vm1, %v1135_v0  ;;  %983 = vmatprep.mubr.msk.f32.mxu0 (!%p240_p9), %vm1137_vm2, %v1135_v0  ;;  %998 = vmatprep.mubr.msk.f32.mxu1 (!%p240_p9), %vm1137_vm2, %v1135_v0  ;;  %s1140_s20 = smov (!%p240_p9), 127   ;;  %v524_v5 = vld [vmem:[%s1357_s2] sm:$0xff] (!%p240_p9)  ;;  %vm296_vm4 = vcmask (!%p240_p9), 1043456   ;;  %v948_v6 = vld [vmem:[%s1356_s1 + $0x8] sm:$0xff] (!%p240_p9) }
  0x10   : > { %1069 = vset.pattern.permute.xlu1 (!%p240_p9), %v1138_v3  ;;  %1070 = vset.pattern.permute.xlu0 (!%p240_p9), %v1138_v3  ;;  %vm292_vm5 = vcmask (!%p240_p9), 31744   ;;  %v285_v8 = vld [vmem:[%s1356_s1] sm:$0xff] (!%p240_p9)  ;;  %v953_v10 = vld [vmem:[%s1356_s1 + $0x10] sm:$0xff] (!%p240_p9)  ;;  %vm532_vm6 = vcmask (!%p240_p9), 7168   ;;  %vm534_vm7 = vcmask (!%p240_p9), 146568   ;;  %vm540_vm8 = vcmask (!%p240_p9), 138248  }
  0x11   : > { %533 = vst.msk [vmem:[#allocation3] sm:$0xff] (!%p240_p9), %vm532_vm6, %v1135_v0  ;;  %v784_v24 = vld [vmem:[%s1361_s6] sm:$0xff] (!%p240_p9)  ;;  %v956_v26 = vld [vmem:[%s1358_s3 + $0x8] sm:$0xff] (!%p240_p9)  ;;  %vm550_vm9 = vcmask (!%p240_p9), 64512   ;;  %v959_v30 = vld [vmem:[%s1358_s3 + $0x10] sm:$0xff] (!%p240_p9)  ;;  %s964_s15 = sshll.u32 (!%p240_p9), %s1203_s28, 7 }
  0x12   : > { %535 = vst.msk [vmem:[#allocation3] sm:$0xff] (!%p240_p9), %vm534_vm7, %v1135_v0  ;;  %v776_v25 = vld [vmem:[%s1359_s4] sm:$0xff] (!%p240_p9)  ;;  %vm867_vm10 = vcmask (!%p240_p9), 130048  }
  0x13   : > { %v542_v28 = vld [vmem:[%s1358_s3] sm:$0xff] (!%p240_p9) }
  0x14   : > { %v783_v31 = vld [vmem:[%s1360_s5] sm:$0xff] (!%p240_p9) }
  0x15   : > { %s271_s13 = scalar_select %p270_p10, %s1203_s28, 1 }
  0x16   : > { %s1141_s28 = smov [#allocation4]  }
  0x17   : > { %s947_s14 = sshll.u32 %s271_s13, 2  ;;  %s267_s13 = sand.u32 1, %s1125_s25  }
  0x18   : > { %s273_s17 = scalar_lea.vmem %s1355_s0, %s947_s14  ;;  %s946_s14 = sshll.u32 %s267_s13, 3 }
  0x19   : > { %v1239_v1 = vld [vmem:[%s273_s17] sm:$0xf]  ;;  %s269_s16 = scalar_lea.vmem [#allocation4], %s946_s14  ;;  %s1075_s23 = sshll.u32 %s1141_s28, 4  ;;  %s1076_s23 = int_to_ptr.vmem [resolvable:$false] %s1075_s23 }
  0x1a   : > { %280 = vrot.lane.b32.xlu0 %v1239_v1, %s1136_s18  ;;  %s883_s17 = sshll.u32 %s269_s16, 4  ;;  %s1077_s29 = scalar_lea.vmem %s1076_s23, 256  ;;  %s1315_s17 = int_to_ptr.vmem [resolvable:$true] %s883_s17 }
  0x1b   : > { %p1078_p0 = scmp.lt.s32.totalorder %s1315_s17, %s1076_s23 }
  0x8c   : > { %v281_v2 = vpop.permute.xlu0 %280 }
  0x8d   : > { %284 = vst.msk [vmem:[#allocation2] sm:$0xf] %vm283_vm3, %v281_v2 }
  0x94   : > { %v286_v4 = vld [vmem:[#allocation2] sm:$0xf] }
  0x95   : > { %446 = vrot.lane.b32.xlu1 %v286_v4, %s1139_s19  ;;  %290 = vrot.lane.b32.xlu0 %v286_v4, %s1140_s20 }
  0x99   : > { %527 = vperm.xlu1 %1069, %v524_v5  }
 0x107   : > { %v291_v7 = vpop.permute.xlu0 %290  ;;  %v447_v9 = vpop.permute.xlu1 %446 }
 0x108   : > { %982 = vmatpush3.msk.msra.mxu0 %vm296_vm4, %v291_v7 }
 0x109   : > { %984 = vmatmul.mubr.msk.f32.vlgmr.msra.gmra.mrb[0].mxu0 %vm292_vm5, %v948_v6  ;;  %986 = vmatprep.subr.mxu0 %v1135_v0 }
 0x10a   : > { %987 = vmatpush3.msk.msra.mxu0 %vm296_vm4, %v286_v4  ;;  %988 = vmatprep.mubr.msk.f32.mxu0 %vm1137_vm2, %v1135_v0 }
 0x10b   : > { %991 = vmatprep.subr.mxu0 %v1135_v0 }
 0x10d   : > { %989 = vmatmul.mubr.msk.f32.vlgmr.msra.gmra.mrb[2].mxu0 %vm292_vm5, %v285_v8 }
 0x10e   : > { %992 = vmatpush3.msk.msra.mxu0 %vm296_vm4, %v447_v9  ;;  %993 = vmatprep.mubr.msk.f32.mxu0 %vm1137_vm2, %v1135_v0 }
 0x111   : > { %994 = vmatmul.mubr.msk.f32.vlgmr.msra.gmra.mrb[4].mxu0 %vm292_vm5, %v953_v10 }
 0x118   : > { %v528_v17 = vpop.permute.xlu1 %527 }
 0x1dc   : > { %v365_v11 = vpop.f32.mrb[0].mxu0 }
 0x1dd   : > { %v985_v12 = vpop.f32.mrb[1].mxu0 }
 0x1e0   : > { %v440_v13 = vpop.f32.mrb[2].mxu0 }
 0x1e1   : > { %v441_v14 = vadd.f32 %v440_v13, %v365_v11  ;;  %v990_v15 = vpop.f32.mrb[3].mxu0 }
 0x1e4   : > { %v519_v16 = vpop.f32.mrb[4].mxu0 }
 0x1e5   : > { %v523_v18 = vadd.f32 %v519_v16, %v441_v14  ;;  %v995_v19 = vpop.f32.mrb[5].mxu0 }
 0x1e7   : > { %v530_v20 = vadd.f32 %v528_v17, %v523_v18 }
 0x1e9   : > { %v531_v21 = vmax.f32 %v530_v20, 0.0 }
 0x1eb   : > { %537 = vrot.lane.b32.xlu0 %v531_v21, %s1136_s18  ;;  %s1313_s18 = scalar_lea.hbm %s1362_s7, %s964_s15 }
 0x25d   : > { %v538_v22 = vpop.permute.xlu0 %537 }
 0x25e   : > { %541 = vst.msk [vmem:[#allocation3] sm:$0xff] %vm540_vm8, %v538_v22 }
 0x265   : > { %v543_v23 = vld [vmem:[#allocation3] sm:$0xff] }
 0x266   : > { %699 = vrot.lane.b32.xlu0 %v543_v23, %s1139_s19  ;;  %547 = vrot.lane.b32.xlu1 %v543_v23, %s1140_s20  ;;  %s870_s19 = scalar_lea.sflag [#allocation5], %s267_s13  ;;  %s1071_s20 = scalar_lea.vmem %s1315_s17, 128 }
 0x267   : > { %p1072_p11 = scmp.ne.s32.totalorder %s1315_s17, %s1071_s20  ;;  %p1079_p1 = scmp.lt.s32.totalorder %s1077_s29, %s1071_s20 }
 0x269   : > { %p1073_p12 = pnand %p1072_p11, %p1220_p5  ;;  %p1080_p2 = por %p1079_p1, %p1078_p0 }
 0x26a   : > { %787 = vperm.xlu0 %1070, %v784_v24   ;;  %779 = vperm.xlu1 %1069, %v776_v25  }
 0x26b   : > { %p1074_p13 = pneg %p1073_p12 }
 0x26d   : > { %p1081_p3 = pnand %p1080_p2, %p1074_p13 }
 0x2d8   : > { %v548_v27 = vpop.permute.xlu1 %547  ;;  %v700_v29 = vpop.permute.xlu0 %699 }
 0x2d9   : > { %997 = vmatpush3.msra.mxu1 %v548_v27 }
 0x2da   : > { %999 = vmatmul.mubr.msk.f32.vlgmr.msra.gmra.mrb[0].mxu1 %vm550_vm9, %v956_v26  ;;  %1001 = vmatprep.subr.mxu1 %v1135_v0 }
 0x2db   : > { %1002 = vmatpush3.msra.mxu1 %v543_v23  ;;  %1003 = vmatprep.mubr.msk.f32.mxu1 %vm1137_vm2, %v1135_v0 }
 0x2dc   : > { %1006 = vmatprep.subr.mxu1 %v1135_v0 }
 0x2e2   : > { %1004 = vmatmul.mubr.msk.f32.vlgmr.msra.gmra.mrb[0].mxu1 %vm550_vm9, %v542_v28 }
 0x2e3   : > { %1007 = vmatpush3.msra.mxu1 %v700_v29  ;;  %1008 = vmatprep.mubr.msk.f32.mxu1 %vm1137_vm2, %v1135_v0 }
 0x2e4   : > { %1011 = vmatprep.subr.mxu1 %v1135_v0 }
 0x2e9   : > { %v788_v32 = vpop.permute.xlu0 %787  ;;  %v780_v33 = vpop.permute.xlu1 %779 }
 0x2ea   : > { %1009 = vmatmul.mubr.msk.f32.vlgmr.msra.gmra.mrb[0].mxu1 %vm550_vm9, %v959_v30  ;;  %v1016_v34 = vadd.f32 %v788_v32, %v780_v33 }
 0x2eb   : > { %1012 = vmatpush3.msk.msra.mxu1 %vm296_vm4, %v1239_v1  ;;  %1013 = vmatprep.mubr.msk.f32.mxu1 %vm1137_vm2, %v1135_v0 }
 0x2f2   : > { %1014 = vmatmul.mubr.msk.f32.vlgmr.msra.gmra.mrb[0].mxu1 %vm292_vm5, %v783_v31 }
 0x3c5   : > { %v861_v35 = vpop.f32.mrb[0].mxu1 }
 0x3c6   : > { %v1017_v36 = vadd.f32 %v1016_v34, %v861_v35  ;;  %v1015_v37 = vpop.f32.mrb[1].mxu1 }
 0x3c8   : > { %v866_v38 = vmax.f32 %v1017_v36, 0.0 }
 0x3ca   : > { %868 = vst.msk [vmem:[%s269_s16] sm:$0xff] %vm867_vm10, %v866_v38 }
 0x3cb   : > { %1084 = shalt.err (!%p1081_p3)
}
 0x3cc   : > { %s1085_s8 = scalar_lea.hbm %s1313_s18, 128  ;;  %s1089_s14 = scalar_lea.hbm %s1362_s7, 256 }
 0x3cd   : > { %p1086_p4 = scmp.ne.s32.totalorder %s1313_s18, %s1085_s8  ;;  %p1090_p9 = scmp.lt.u32.totalorder %s1313_s18, %s1362_s7 }
 0x3ce   : > { %p1091_p10 = scmp.lt.u32.totalorder %s1089_s14, %s1085_s8  ;;  %p1093_p12 = scmp.lt.u32.totalorder %s1085_s8, %s1313_s18 }
 0x3cf   : > { %p1087_p7 = pnand %p1086_p4, %p1220_p5 }
 0x3d0   : > { %p1092_p11 = por %p1091_p10, %p1090_p9 }
 0x3d1   : > { %p1088_p8 = pneg %p1087_p7 }
 0x3d2   : > { %p1094_p13 = por %p1093_p12, %p1092_p11 }
 0x3d4   : > { %p1095_p0 = pnand %p1094_p13, %p1088_p8 }
 0x3d6   : > { %1098 = shalt.err (!%p1095_p0)
}
 0x3d7   : > { %1024 = dma.vmem_to_hbm [thread:$0]  (%p1220_p5), %s1315_s17, 128, %s1313_s18, %s870_s19  }
 0x3d8 PF: > { %p1030_p1 = scmp.ge.s32.totalorder %s1133_s27, 2  ;;  %s895_s21 = sand.u32 1, %s1121_s24  }
 0x3d9   : > { %s896_s22 = scalar_lea.sflag [#allocation5], %s895_s21 }
 0x3da   : > { %p1027_p2 = pnand %p1030_p1, %p1224_p6 }
 0x3dc   : > { %1116 = dma.done.wait (!%p1027_p2), %s896_s22, 128  }
 0x3dd   : > { %1118 = vsyncadd (!%p1027_p2), %s896_s22, 4294967168  ;;  %p17_p3 = scmp.ge.s32.totalorder %s1207_s30, 4   ;;  %s1365_s24 = smov %s1125_s25 }
 0x3de   : > { %s1366_s25 = smov %s1129_s26  ;;  %s1367_s26 = smov %s1218_s10 }
 0x3df   : > { %s1368_s27 = smov %s1207_s30  ;;  %19 = sbr.rel (!%p17_p3) target bundleno = 3 (0x3), region = 87 }
 0x3e6   :  { %901 = vsyncpa [#allocation5], 1 }
 0x3e7   :  { %903 = vsyncpa [#allocation5 + $0x1], 1 }

</bundles_post_ra>
